<compile_context>
chip_gen: v7x
topology: tpu7x:2x2x1
jax: 0.10.0
libtpu: 0.0.40
codegen_flags: <defaults>
</compile_context>

<pallas_src>
import functools

import jax
import jax.numpy as jnp
from jax.experimental import pallas as pl
from jax.experimental.pallas import tpu as pltpu

_LANES = 128           # boxes per slab row
_ROW_W = 4 * _LANES    # 512 interleaved lanes per slab row


def _round_up(x, m):
    return ((x + m - 1) // m) * m


def _row_tile_target():
    # Bigger tiles on v7x (faster HBM -> fixed per-step overhead is relatively larger);
    # 1024 keeps double-buffered blocks within v5e's 16 MiB scoped-VMEM default.
    try:
        kind = jax.devices()[0].device_kind.lower()
    except Exception:
        return 1024
    return 2048 if "7" in kind else 1024


def _pick_row_tile(rows, target):
    """Row tile (multiple of 16: f32/bf16 sublane friendly) minimizing padding waste."""
    r16 = _round_up(rows, 16)
    if r16 <= target:
        return r16, r16
    best_tile, best_padded = target, _round_up(r16, target)
    for cand in range(target - 16, 511, -16):
        padded = _round_up(r16, cand)
        if padded < best_padded:
            best_tile, best_padded = cand, padded
    return best_tile, best_padded


def _iou_loss_kernel(pred_ref, tgt_ref, out_ref, *, loss_type, fuse_sum, row_tile, n_boxes):
    # pred_ref / tgt_ref: (row_tile, 512) with lanes [cx, cy, w, h] * 128 boxes.
    p = pred_ref[...].astype(jnp.float32)
    t = tgt_ref[...].astype(jnp.float32)

    def comp(x, c):
        # Align component c of box k onto lane 4*k + 3.
        # jnp.roll semantics: roll(x, s)[..., j] == x[..., j - s], so shift = 3 - c.
        s = 3 - c
        return x if s == 0 else pltpu.roll(x, shift=s, axis=1)

    px, py, pw, ph = comp(p, 0), comp(p, 1), comp(p, 2), comp(p, 3)
    tx, ty, tw, th = comp(t, 0), comp(t, 1), comp(t, 2), comp(t, 3)

    # hoisted half-extents / corners (reused by the giou branch)
    pw2, ph2, tw2, th2 = pw * 0.5, ph * 0.5, tw * 0.5, th * 0.5
    p_x0, p_x1 = px - pw2, px + pw2
    p_y0, p_y1 = py - ph2, py + ph2
    t_x0, t_x1 = tx - tw2, tx + tw2
    t_y0, t_y1 = ty - th2, ty + th2

    tl_x = jnp.maximum(p_x0, t_x0)
    tl_y = jnp.maximum(p_y0, t_y0)
    br_x = jnp.minimum(p_x1, t_x1)
    br_y = jnp.minimum(p_y1, t_y1)

    area_p = pw * ph
    area_g = tw * th
    en = ((tl_x < br_x) & (tl_y < br_y)).astype(jnp.float32)
    area_i = (br_x - tl_x) * (br_y - tl_y) * en
    area_u = area_p + area_g - area_i
    iou = area_i / (area_u + 1e-16)

    if loss_type == "iou":
        loss = 1.0 - iou * iou
    elif loss_type == "giou":
        c_w = jnp.maximum(p_x1, t_x1) - jnp.minimum(p_x0, t_x0)
        c_h = jnp.maximum(p_y1, t_y1) - jnp.minimum(p_y0, t_y0)
        area_c = c_w * c_h
        giou = iou - (area_c - area_u) / jnp.maximum(area_c, 1e-16)
        loss = 1.0 - jnp.clip(giou, -1.0, 1.0)
    else:
        raise ValueError(f"unknown loss_type {loss_type!r}")

    if not fuse_sum:
        # Valid only at lanes 4k+3; the wrapper compacts with a free-ish strided view.
        out_ref[...] = loss
    else:
        shape = loss.shape
        lane = jax.lax.broadcasted_iota(jnp.int32, shape, 1)
        row = jax.lax.broadcasted_iota(jnp.int32, shape, 0) + pl.program_id(0) * row_tile
        box = row * _LANES + lane // 4
        valid = ((lane % 4) == 3) & (box < n_boxes)
        part = jnp.sum(jnp.where(valid, loss, 0.0), axis=0, keepdims=True)  # (1, 512)
        row8 = jax.lax.broadcasted_iota(jnp.int32, (8, _ROW_W), 0)
        out_ref[...] = jnp.where(row8 == 0, part, 0.0)


def _iou_loss_pallas(pred, target, reduction, loss_type):
    n = pred.shape[0]
    # Stream inputs in their native f32/bf16 dtype; cast to f32 inside the kernel.
    if pred.dtype != target.dtype or pred.dtype not in (jnp.float32, jnp.bfloat16):
        pred = pred.astype(jnp.float32)
        target = target.astype(jnp.float32)

    rows = (n + _LANES - 1) // _LANES
    row_tile, rows_pad = _pick_row_tile(rows, _row_tile_target())
    n_pad = rows_pad * _LANES
    num_tiles = rows_pad // row_tile

    def as_rows(x):
        # TODO(synk): when n is not row-aligned this zero-pad is one extra HBM pass per
        # operand; a ragged/partial last block would remove it.
        if n_pad != n:
            x = jnp.pad(x, ((0, n_pad - n), (0, 0)))
        return x.reshape(rows_pad, _ROW_W)  # free reshape, no transpose

    p2, t2 = as_rows(pred), as_rows(target)

    fuse_sum = reduction in ("mean", "sum")
    if fuse_sum:
        out_shape = jax.ShapeDtypeStruct((num_tiles * 8, _ROW_W), jnp.float32)
        out_spec = pl.BlockSpec((8, _ROW_W), lambda i: (i, 0))
    else:
        out_shape = jax.ShapeDtypeStruct((rows_pad, _ROW_W), jnp.float32)
        out_spec = pl.BlockSpec((row_tile, _ROW_W), lambda i: (i, 0))

    kernel = functools.partial(
        _iou_loss_kernel,
        loss_type=loss_type,
        fuse_sum=fuse_sum,
        row_tile=row_tile,
        n_boxes=n,
    )

    out = pl.pallas_call(
        kernel,
        out_shape=out_shape,
        grid=(num_tiles,),
        in_specs=[
            pl.BlockSpec((row_tile, _ROW_W), lambda i: (i, 0)),
            pl.BlockSpec((row_tile, _ROW_W), lambda i: (i, 0)),
        ],
        out_specs=out_spec,
        compiler_params=pltpu.CompilerParams(dimension_semantics=("parallel",)),
    )(p2, t2)

    if fuse_sum:
        total = jnp.sum(out)
        return total / n if reduction == "mean" else total
    # box b's loss lives at lane 4*(b % 128) + 3 of row b // 128
    return out.reshape(-1, 4)[:n, 3]


def iou_loss(pred, target, reduction="none", loss_type="iou", *, min_pallas_boxes=16384):
    """JAX/Pallas equivalent of IOUloss.forward."""
    assert pred.shape[0] == target.shape[0]
    if loss_type not in ("iou", "giou"):
        raise ValueError(f"unknown loss_type {loss_type!r}")
    pred = jnp.reshape(pred, (-1, 4))
    target = jnp.reshape(target, (-1, 4))
    n = pred.shape[0]
    if n < min_pallas_boxes:
        # Small-N fast path: fixed repack/launch cost cannot win; XLA fuses this fully.
        return _iou_loss_ref(pred, target, reduction, loss_type)
    return _iou_loss_pallas(pred, target, reduction, loss_type)


def _iou_loss_ref(pred, target, reduction="none", loss_type="iou"):
    """Pure-JAX reference mirroring the PyTorch module (also the small-N fast path)."""
    pred = jnp.reshape(pred, (-1, 4)).astype(jnp.float32)
    target = jnp.reshape(target, (-1, 4)).astype(jnp.float32)
    tl = jnp.maximum(pred[:, :2] - pred[:, 2:] / 2, target[:, :2] - target[:, 2:] / 2)
    br = jnp.minimum(pred[:, :2] + pred[:, 2:] / 2, target[:, :2] + target[:, 2:] / 2)
    area_p = jnp.prod(pred[:, 2:], axis=1)
    area_g = jnp.prod(target[:, 2:], axis=1)
    en = jnp.prod((tl < br).astype(jnp.float32), axis=1)
    area_i = jnp.prod(br - tl, axis=1) * en
    area_u = area_p + area_g - area_i
    iou = area_i / (area_u + 1e-16)
    if loss_type == "iou":
        loss = 1 - iou ** 2
    else:
        c_tl = jnp.minimum(pred[:, :2] - pred[:, 2:] / 2, target[:, :2] - target[:, 2:] / 2)
        c_br = jnp.maximum(pred[:, :2] + pred[:, 2:] / 2, target[:, :2] + target[:, 2:] / 2)
        area_c = jnp.prod(c_br - c_tl, axis=1)
        giou = iou - (area_c - area_u) / jnp.maximum(area_c, 1e-16)
        loss = 1 - jnp.clip(giou, -1.0, 1.0)
    if reduction == "mean":
        loss = loss.mean()
    elif reduction == "sum":
        loss = loss.sum()
    return loss


def _make_boxes(key, n):
    kc, ks = jax.random.split(key)
    return jnp.concatenate(
        [jax.random.uniform(kc, (n, 2)) * 16.0,          # centers
         jax.random.uniform(ks, (n, 2)) * 8.0 + 1.0],    # sizes > 0
        axis=1,
    )


if __name__ == "__main__":
    key = jax.random.PRNGKey(0)
    ks = jax.random.split(key, 8)

    def check(n, reduction, loss_type, kp, kt, tol):
        pred = _make_boxes(kp, n)
        target = _make_boxes(kt, n)
        got = iou_loss(pred, target, reduction, loss_type, min_pallas_boxes=0)  # force Pallas
        jax.block_until_ready(got)
        ref = _iou_loss_ref(pred, target, reduction, loss_type)
        assert got.shape == ref.shape, (got.shape, ref.shape)
        assert jnp.allclose(got, ref, atol=tol, rtol=tol), (n, reduction, loss_type)

    # elementwise, ragged N (wrapper pad path), default module config
    check(8, "none", "iou", ks[0], ks[1], 1e-5)
    # fused mean reduction + giou branch, ragged N
    check(300, "mean", "giou", ks[2], ks[3], 1e-4)
    # row-aligned N (no wrapper pad: free reshape only), elementwise giou
    check(2048, "none", "giou", ks[4], ks[5], 1e-5)
    # row-aligned N, fused sum reduction
    check(2048, "sum", "iou", ks[6], ks[7], 1e-4)

    # public API with the small-N fast path
    small = iou_loss(_make_boxes(ks[0], 16), _make_boxes(ks[1], 16))
    jax.block_until_ready(small)
    assert small.shape == (16,)

    print("KERNEL_OK")
</pallas_src>

<mosaic_0001>
module attributes {stable_mosaic.version = 11 : i64} {
  func.func @_iou_loss_kernel(%arg0: i32, %arg1: memref<16x512xf32, #tpu.memory_space<vmem>>, %arg2: memref<16x512xf32, #tpu.memory_space<vmem>>, %arg3: memref<16x512xf32, #tpu.memory_space<vmem>>) attributes {dimension_semantics = [#tpu.dimension_semantics<parallel>], iteration_bounds = array<i64: 1>, scalar_prefetch = 0 : i64, scratch_operands = 0 : i64, tpu.core_type = #tpu.core_type<tc>, window_params = [{transform_indices = @transform_0, window_bounds = array<i64: 16, 512>}, {transform_indices = @transform_1, window_bounds = array<i64: 16, 512>}, {transform_indices = @transform_2, window_bounds = array<i64: 16, 512>}]} {
    %c0 = arith.constant 0 : index
    %c0_0 = arith.constant 0 : index
    %0 = vector.load %arg1[%c0, %c0_0] : memref<16x512xf32, #tpu.memory_space<vmem>>, vector<16x512xf32>
    %c0_1 = arith.constant 0 : index
    %c0_2 = arith.constant 0 : index
    %1 = vector.load %arg2[%c0_1, %c0_2] : memref<16x512xf32, #tpu.memory_space<vmem>>, vector<16x512xf32>
    %c3_i32 = arith.constant 3 : i32
    %2 = tpu.dynamic_rotate %0 by %c3_i32 dim 1 : vector<16x512xf32>, i32 -> vector<16x512xf32>
    %c2_i32 = arith.constant 2 : i32
    %3 = tpu.dynamic_rotate %0 by %c2_i32 dim 1 : vector<16x512xf32>, i32 -> vector<16x512xf32>
    %c1_i32 = arith.constant 1 : i32
    %4 = tpu.dynamic_rotate %0 by %c1_i32 dim 1 : vector<16x512xf32>, i32 -> vector<16x512xf32>
    %c3_i32_3 = arith.constant 3 : i32
    %5 = tpu.dynamic_rotate %1 by %c3_i32_3 dim 1 : vector<16x512xf32>, i32 -> vector<16x512xf32>
    %c2_i32_4 = arith.constant 2 : i32
    %6 = tpu.dynamic_rotate %1 by %c2_i32_4 dim 1 : vector<16x512xf32>, i32 -> vector<16x512xf32>
    %c1_i32_5 = arith.constant 1 : i32
    %7 = tpu.dynamic_rotate %1 by %c1_i32_5 dim 1 : vector<16x512xf32>, i32 -> vector<16x512xf32>
    %cst = arith.constant 5.000000e-01 : f32
    %8 = vector.broadcast %cst : f32 to vector<16x512xf32>
    %9 = arith.mulf %4, %8 : vector<16x512xf32>
    %cst_6 = arith.constant 5.000000e-01 : f32
    %10 = vector.broadcast %cst_6 : f32 to vector<16x512xf32>
    %11 = arith.mulf %0, %10 : vector<16x512xf32>
    %cst_7 = arith.constant 5.000000e-01 : f32
    %12 = vector.broadcast %cst_7 : f32 to vector<16x512xf32>
    %13 = arith.mulf %7, %12 : vector<16x512xf32>
    %cst_8 = arith.constant 5.000000e-01 : f32
    %14 = vector.broadcast %cst_8 : f32 to vector<16x512xf32>
    %15 = arith.mulf %1, %14 : vector<16x512xf32>
    %16 = arith.subf %2, %9 : vector<16x512xf32>
    %17 = arith.addf %2, %9 : vector<16x512xf32>
    %18 = arith.subf %3, %11 : vector<16x512xf32>
    %19 = arith.addf %3, %11 : vector<16x512xf32>
    %20 = arith.subf %5, %13 : vector<16x512xf32>
    %21 = arith.addf %5, %13 : vector<16x512xf32>
    %22 = arith.subf %6, %15 : vector<16x512xf32>
    %23 = arith.addf %6, %15 : vector<16x512xf32>
    %24 = arith.maximumf %16, %20 : vector<16x512xf32>
    %25 = arith.maximumf %18, %22 : vector<16x512xf32>
    %26 = arith.minimumf %17, %21 : vector<16x512xf32>
    %27 = arith.minimumf %19, %23 : vector<16x512xf32>
    %28 = arith.mulf %4, %0 : vector<16x512xf32>
    %29 = arith.mulf %7, %1 : vector<16x512xf32>
    %30 = arith.cmpf olt, %24, %26 : vector<16x512xf32>
    %31 = arith.cmpf olt, %25, %27 : vector<16x512xf32>
    %32 = arith.andi %30, %31 : vector<16x512xi1>
    %33 = arith.extui %32 : vector<16x512xi1> to vector<16x512xi32>
    %34 = arith.sitofp %33 : vector<16x512xi32> to vector<16x512xf32>
    %35 = arith.subf %26, %24 : vector<16x512xf32>
    %36 = arith.subf %27, %25 : vector<16x512xf32>
    %37 = arith.mulf %35, %36 : vector<16x512xf32>
    %38 = arith.mulf %37, %34 : vector<16x512xf32>
    %39 = arith.addf %28, %29 : vector<16x512xf32>
    %40 = arith.subf %39, %38 : vector<16x512xf32>
    %cst_9 = arith.constant 1.000000e-16 : f32
    %41 = vector.broadcast %cst_9 : f32 to vector<16x512xf32>
    %42 = arith.addf %40, %41 : vector<16x512xf32>
    %43 = arith.divf %38, %42 : vector<16x512xf32>
    %44 = arith.mulf %43, %43 : vector<16x512xf32>
    %cst_10 = arith.constant 1.000000e+00 : f32
    %45 = vector.broadcast %cst_10 : f32 to vector<16x512xf32>
    %46 = arith.subf %45, %44 : vector<16x512xf32>
    %c0_11 = arith.constant 0 : index
    %c0_12 = arith.constant 0 : index
    %47 = vector.load %arg3[%c0_11, %c0_12] : memref<16x512xf32, #tpu.memory_space<vmem>>, vector<16x512xf32>
    tpu.vector_store %arg3[%c0_11, %c0_12], %46 {strides = array<i32>} : memref<16x512xf32, #tpu.memory_space<vmem>>, vector<16x512xf32>,
    return
  }
  func.func @transform_0(%arg0: i32) -> (i32, i32) {
    %c0_i32 = arith.constant 0 : i32
    %c0_i32_0 = arith.constant 0 : i32
    return %arg0, %c0_i32 : i32, i32
  }
  func.func @transform_1(%arg0: i32) -> (i32, i32) {
    %c0_i32 = arith.constant 0 : i32
    %c0_i32_0 = arith.constant 0 : i32
    return %arg0, %c0_i32 : i32, i32
  }
  func.func @transform_2(%arg0: i32) -> (i32, i32) {
    %c0_i32 = arith.constant 0 : i32
    %c0_i32_0 = arith.constant 0 : i32
    return %arg0, %c0_i32 : i32, i32
  }
}

</mosaic_0001>

<bundles_post_ra>
// kernel: tpu_custom_call.1
= control target key start
LH: loop header
LB: loop body
LE: loop exit
PB: predicated region body
PF: predicated region fallthrough
CT: control target
= control target key end

     0   :  { %7 = vsyncpa [#allocation3], 0  ;;  %s1450_s0 = inlined_call_operand.hbm [shape: f32[16,512], index: 0, kind: input, shape index: {}]   ;;  %s1451_s1 = inlined_call_operand.hbm [shape: f32[16,512], index: 1, kind: input, shape index: {}]   ;;  %s1452_s2 = inlined_call_operand.hbm [shape: f32[16,512], index: 2, kind: output, shape index: {}]  }
   0x1   :  { %8 = vsyncpa [#allocation6], 0 }
   0x2   :  { %9 = vsyncpa [#allocation4], 0  ;;  %s608_s9 = smov [#allocation2]   ;;  %s536_s13 = scalar_lea.hbm %s1450_s0, 1024 }
   0x3   :  { %s15_s10 = sshll.u32 %s608_s9, 4  ;;  %p537_p0 = scmp.ne.s32.totalorder %s1450_s0, %s536_s13  ;;  %s16_s10 = int_to_ptr.vmem [resolvable:$true] %s15_s10 }
   0x4   :  { %p540_p1 = scmp.lt.u32.totalorder %s536_s13, %s1450_s0 }
   0x6   :  { %p542_p2 = pnand %p540_p1, %p537_p0 }
   0x8   :  { %545 = shalt.err (!%p542_p2)
}
   0x9   :  { %s546_s18 = scalar_lea.vmem %s16_s10, 1024  ;;  %p551_p4 = scmp.lt.s32.totalorder %s16_s10, %s16_s10 }
   0xa   :  { %p547_p3 = scmp.ne.s32.totalorder %s16_s10, %s546_s18  ;;  %p552_p5 = scmp.lt.s32.totalorder %s546_s18, %s546_s18 }
   0xc   :  { %p553_p6 = por %p552_p5, %p551_p4 }
   0xe   :  { %p554_p7 = pnand %p553_p6, %p547_p3 }
  0x10   :  { %557 = shalt.err (!%p554_p7)
}
  0x11   :  { %s609_s19 = smov 512   ;;  %s610_s20 = smov 32  }
  0x12   :  { %21 = dma.hbm_to_vmem [thread:$0]  %s1450_s0, 1024, %s16_s10, [#allocation3], %s609_s19, %s609_s19, %s610_s20  }
  0x13   :  { %s611_s23 = smov [#allocation5]   ;;  %s558_s27 = scalar_lea.hbm %s1451_s1, 1024 }
  0x14   :  { %s27_s24 = sshll.u32 %s611_s23, 4  ;;  %p559_p8 = scmp.ne.s32.totalorder %s1451_s1, %s558_s27  ;;  %s28_s24 = int_to_ptr.vmem [resolvable:$true] %s27_s24 }
  0x15   :  { %p562_p9 = scmp.lt.u32.totalorder %s558_s27, %s1451_s1 }
  0x17   :  { %p564_p10 = pnand %p562_p9, %p559_p8 }
  0x19   :  { %567 = shalt.err (!%p564_p10)
}
  0x1a   :  { %s568_s4 = scalar_lea.vmem %s28_s24, 1024  ;;  %p573_p12 = scmp.lt.s32.totalorder %s28_s24, %s28_s24 }
  0x1b   :  { %p569_p11 = scmp.ne.s32.totalorder %s28_s24, %s568_s4  ;;  %p574_p13 = scmp.lt.s32.totalorder %s568_s4, %s568_s4 }
  0x1d   :  { %p575_p0 = por %p574_p13, %p573_p12 }
  0x1f   :  { %p576_p1 = pnand %p575_p0, %p569_p11 }
  0x21   :  { %579 = shalt.err (!%p576_p1)
}
  0x22   :  { %33 = dma.hbm_to_vmem [thread:$0]  %s1451_s1, 1024, %s28_s24, [#allocation6], %s609_s19, %s609_s19, %s610_s20  }
  0x23   :  { %602 = dma.done.wait [#allocation3], 1024  }
  0x24   :  { %603 = vsyncadd [#allocation3], 4294966272 }
  0x25   :  { %604 = dma.done.wait [#allocation6], 1024  }
  0x26   :  { %605 = vsyncadd [#allocation6], 4294966272  ;;  %v662_v0 = vld [vmem:[#allocation2] sm:$0xff]  ;;  %s612_s6 = smov 1   ;;  %s613_s7 = smov 3   ;;  %v674_v2 = vld [vmem:[#allocation2 + $0x28] sm:$0xff]  ;;  %v72_v16 = vlaneseq }
  0x27   :  { %108 = vrot.lane.b32.xlu1 %v662_v0, %s612_s6  ;;  %56 = vrot.lane.b32.xlu0 %v662_v0, %s613_s7  ;;  %v668_v1 = vld [vmem:[#allocation2 + $0x20] sm:$0xff]  ;;  %v676_v3 = vld [vmem:[#allocation2 + $0x8] sm:$0xff]  ;;  %v682_v4 = vld [vmem:[#allocation2 + $0x30] sm:$0xff]  ;;  %s614_s1 = smov 2   ;;  %s616_s8 = smov [#allocation7]  }
  0x28   :  { %v684_v5 = vld [vmem:[#allocation2 + $0x10] sm:$0xff]  ;;  %v690_v6 = vld [vmem:[#allocation2 + $0x38] sm:$0xff]  ;;  %v698_v8 = vld [vmem:[#allocation5 + $0x20] sm:$0xff]  ;;  %v774_v19 = vand.u32 127, %v72_v16  ;;  %s490_s9 = sshll.u32 %s616_s8, 4  ;;  %s491_s9 = int_to_ptr.vmem [resolvable:$true] %s490_s9 }
  0x29   :  { %v692_v7 = vld [vmem:[#allocation2 + $0x18] sm:$0xff]  ;;  %v700_v9 = vld [vmem:[#allocation5] sm:$0xff]  ;;  %v706_v10 = vld [vmem:[#allocation5 + $0x28] sm:$0xff]  ;;  %s580_s10 = scalar_lea.vmem %s491_s9, 1024  ;;  %p585_p3 = scmp.lt.s32.totalorder %s491_s9, %s491_s9 }
  0x2a   :  { %v708_v11 = vld [vmem:[#allocation5 + $0x8] sm:$0xff]  ;;  %v714_v12 = vld [vmem:[#allocation5 + $0x30] sm:$0xff]  ;;  %v722_v14 = vld [vmem:[#allocation5 + $0x38] sm:$0xff]  ;;  %vm124_vm0 = vcmp.lt.s32.totalorder %v774_v19, 1  ;;  %vm74_vm1 = vcmp.lt.s32.totalorder %v774_v19, 3  ;;  %vm99_vm2 = vcmp.lt.s32.totalorder %v774_v19, 2  ;;  %p581_p2 = scmp.ne.s32.totalorder %s491_s9, %s580_s10  ;;  %p586_p4 = scmp.lt.s32.totalorder %s580_s10, %s580_s10 }
  0x2b   :  { %110 = vrot.lane.b32.xlu1 %v668_v1, %s612_s6  ;;  %58 = vrot.lane.b32.xlu0 %v668_v1, %s613_s7  ;;  %v716_v13 = vld [vmem:[#allocation5 + $0x10] sm:$0xff]  ;;  %v724_v15 = vld [vmem:[#allocation5 + $0x18] sm:$0xff] }
  0x2c   :  { %p587_p5 = por %p586_p4, %p585_p3 }
  0x2e   :  { %p588_p6 = pnand %p587_p5, %p581_p2 }
  0x2f   :  { %114 = vrot.lane.b32.xlu1 %v674_v2, %s612_s6  ;;  %112 = vrot.lane.b32.xlu0 %v676_v3, %s612_s6 }
  0x33   :  { %118 = vrot.lane.b32.xlu1 %v682_v4, %s612_s6  ;;  %116 = vrot.lane.b32.xlu0 %v684_v5, %s612_s6 }
  0x37   :  { %122 = vrot.lane.b32.xlu1 %v690_v6, %s612_s6  ;;  %120 = vrot.lane.b32.xlu0 %v692_v7, %s612_s6 }
  0x3b   :  { %183 = vrot.lane.b32.xlu1 %v698_v8, %s612_s6  ;;  %181 = vrot.lane.b32.xlu0 %v700_v9, %s612_s6 }
  0x3f   :  { %187 = vrot.lane.b32.xlu1 %v706_v10, %s612_s6  ;;  %185 = vrot.lane.b32.xlu0 %v708_v11, %s612_s6 }
  0x43   :  { %191 = vrot.lane.b32.xlu1 %v714_v12, %s612_s6  ;;  %189 = vrot.lane.b32.xlu0 %v716_v13, %s612_s6 }
  0x47   :  { %195 = vrot.lane.b32.xlu1 %v722_v14, %s612_s6  ;;  %193 = vrot.lane.b32.xlu0 %v724_v15, %s612_s6 }
  0x4b   :  { %62 = vrot.lane.b32.xlu1 %v674_v2, %s613_s7  ;;  %60 = vrot.lane.b32.xlu0 %v676_v3, %s613_s7 }
  0x4f   :  { %66 = vrot.lane.b32.xlu1 %v682_v4, %s613_s7  ;;  %64 = vrot.lane.b32.xlu0 %v684_v5, %s613_s7 }
  0x53   :  { %70 = vrot.lane.b32.xlu1 %v690_v6, %s613_s7  ;;  %68 = vrot.lane.b32.xlu0 %v692_v7, %s613_s7 }
  0x57   :  { %85 = vrot.lane.b32.xlu1 %v668_v1, %s614_s1  ;;  %83 = vrot.lane.b32.xlu0 %v662_v0, %s614_s1 }
  0x5b   :  { %89 = vrot.lane.b32.xlu1 %v674_v2, %s614_s1  ;;  %87 = vrot.lane.b32.xlu0 %v676_v3, %s614_s1 }
  0x5f   :  { %93 = vrot.lane.b32.xlu1 %v682_v4, %s614_s1  ;;  %91 = vrot.lane.b32.xlu0 %v684_v5, %s614_s1 }
  0x63   :  { %97 = vrot.lane.b32.xlu1 %v690_v6, %s614_s1  ;;  %95 = vrot.lane.b32.xlu0 %v692_v7, %s614_s1 }
  0x67   :  { %135 = vrot.lane.b32.xlu1 %v698_v8, %s613_s7  ;;  %133 = vrot.lane.b32.xlu0 %v700_v9, %s613_s7 }
  0x6b   :  { %139 = vrot.lane.b32.xlu1 %v706_v10, %s613_s7  ;;  %137 = vrot.lane.b32.xlu0 %v708_v11, %s613_s7 }
  0x6f   :  { %143 = vrot.lane.b32.xlu1 %v714_v12, %s613_s7  ;;  %141 = vrot.lane.b32.xlu0 %v716_v13, %s613_s7 }
  0x73   :  { %147 = vrot.lane.b32.xlu1 %v722_v14, %s613_s7  ;;  %145 = vrot.lane.b32.xlu0 %v724_v15, %s613_s7 }
  0x77   :  { %159 = vrot.lane.b32.xlu1 %v698_v8, %s614_s1  ;;  %157 = vrot.lane.b32.xlu0 %v700_v9, %s614_s1 }
  0x7b   :  { %163 = vrot.lane.b32.xlu1 %v706_v10, %s614_s1  ;;  %161 = vrot.lane.b32.xlu0 %v708_v11, %s614_s1 }
  0x7f   :  { %167 = vrot.lane.b32.xlu1 %v714_v12, %s614_s1  ;;  %165 = vrot.lane.b32.xlu0 %v716_v13, %s614_s1 }
  0x83   :  { %171 = vrot.lane.b32.xlu1 %v722_v14, %s614_s1  ;;  %169 = vrot.lane.b32.xlu0 %v724_v15, %s614_s1 }
  0x99   :  { %v109_v17 = vpop.permute.xlu1 %108  ;;  %v57_v18 = vpop.permute.xlu0 %56 }
  0x9d   :  { %v111_v20 = vpop.permute.xlu1 %110  ;;  %v59_v21 = vpop.permute.xlu0 %58 }
  0xa1   :  { %v115_v22 = vpop.permute.xlu1 %114  ;;  %v113_v23 = vpop.permute.xlu0 %112 }
  0xa2   :  { %v779_v24 = vsel %vm124_vm0, %v111_v20, %v115_v22  ;;  %v783_v25 = vsel %vm124_vm0, %v109_v17, %v113_v23 }
  0xa3   :  { %v839_v56 = vmul.f32 0.5, %v779_v24  ;;  %v842_v57 = vmul.f32 0.5, %v783_v25 }
  0xa5   :  { %v119_v26 = vpop.permute.xlu1 %118  ;;  %v117_v27 = vpop.permute.xlu0 %116 }
  0xa6   :  { %v787_v28 = vsel %vm124_vm0, %v115_v22, %v119_v26  ;;  %v791_v29 = vsel %vm124_vm0, %v113_v23, %v117_v27  ;;  %v928_v23 = vmul.f32 0.5, %v684_v5 }
  0xa9   :  { %v123_v30 = vpop.permute.xlu1 %122  ;;  %v121_v31 = vpop.permute.xlu0 %120 }
  0xaa   :  { %v795_v32 = vsel %vm124_vm0, %v119_v26, %v123_v30  ;;  %v132_v33 = vsel %vm124_vm0, %v123_v30, %v111_v20  ;;  %v801_v34 = vsel %vm124_vm0, %v117_v27, %v121_v31  ;;  %v131_v35 = vsel %vm124_vm0, %v121_v31, %v109_v17 }
  0xab   :  { %v337_v48 = vmul.f32 %v132_v33, %v668_v1  ;;  %v340_v49 = vmul.f32 %v795_v32, %v690_v6  ;;  %v333_v52 = vmul.f32 %v131_v35, %v662_v0  ;;  %v336_v53 = vmul.f32 %v801_v34, %v692_v7 }
  0xac   :  { %v882_v31 = vmul.f32 0.5, %v132_v33  ;;  %v931_v20 = vmul.f32 0.5, %v668_v1 }
  0xad   :  { %v184_v36 = vpop.permute.xlu1 %183  ;;  %v182_v37 = vpop.permute.xlu0 %181 }
  0xb1   :  { %v188_v38 = vpop.permute.xlu1 %187  ;;  %v805_v39 = vpop.permute.xlu0 %185 }
  0xb5   :  { %v192_v40 = vpop.permute.xlu1 %191  ;;  %v190_v41 = vpop.permute.xlu0 %189 }
  0xb9   :  { %v196_v42 = vpop.permute.xlu1 %195  ;;  %v194_v43 = vpop.permute.xlu0 %193 }
  0xba   :  { %v810_v44 = vsel %vm124_vm0, %v192_v40, %v196_v42  ;;  %v814_v45 = vsel %vm124_vm0, %v196_v42, %v184_v36  ;;  %v818_v46 = vsel %vm124_vm0, %v190_v41, %v194_v43  ;;  %v822_v47 = vsel %vm124_vm0, %v194_v43, %v182_v37 }
  0xbb   :  { %v345_v50 = vmul.f32 %v814_v45, %v698_v8  ;;  %v348_v51 = vmul.f32 %v810_v44, %v722_v14  ;;  %v341_v54 = vmul.f32 %v822_v47, %v700_v9  ;;  %v344_v55 = vmul.f32 %v818_v46, %v724_v15 }
  0xbd   :  { %v844_v58 = vadd.f32 %v345_v50, %v337_v48  ;;  %v846_v59 = vadd.f32 %v348_v51, %v340_v49  ;;  %v848_v60 = vpop.permute.xlu1 %62  ;;  %v850_v61 = vpop.permute.xlu0 %60  ;;  %v852_v62 = vadd.f32 %v341_v54, %v333_v52  ;;  %v854_v63 = vadd.f32 %v344_v55, %v336_v53 }
  0xbe   :  { %v859_v16 = vsel %vm74_vm1, %v59_v21, %v848_v60  ;;  %v864_v17 = vsel %vm74_vm1, %v57_v18, %v850_v61  ;;  %v886_v48 = vmul.f32 0.5, %v131_v35  ;;  %v918_v55 = vmul.f32 0.5, %v674_v2 }
  0xbf   :  { %1462 = vst [vmem:[#allocation11_spill] sm:$0xff] %v844_v58  ;;  %1463 = vst [vmem:[#allocation12_spill] sm:$0xff] %v846_v59  ;;  %v870_v22 = vadd.f32 %v839_v56, %v859_v16  ;;  %v876_v26 = vadd.f32 %v842_v57, %v864_v17  ;;  %v922_v51 = vmul.f32 0.5, %v676_v3  ;;  %v925_v35 = vmul.f32 0.5, %v682_v4 }
  0xc0   :  { %1464 = vst [vmem:[#allocation13_spill] sm:$0xff] %v852_v62  ;;  %1465 = vst [vmem:[#allocation14_spill] sm:$0xff] %v854_v63  ;;  %v202_v63 = vsel %vm124_vm0, %v184_v36, %v188_v38  ;;  %v201_v62 = vsel %vm124_vm0, %v182_v37, %v805_v39  ;;  %v939_v59 = vmul.f32 0.5, %v690_v6  ;;  %v942_v58 = vmul.f32 0.5, %v692_v7 }
  0xc1   :  { %v878_v27 = vpop.permute.xlu1 %66  ;;  %v880_v30 = vpop.permute.xlu0 %64  ;;  %1466 = vst [vmem:[#allocation15_spill] sm:$0xff] %v886_v48  ;;  %v954_v36 = vmul.f32 0.5, %v706_v10  ;;  %v199_v6 = vsel %vm124_vm0, %v805_v39, %v190_v41  ;;  %v960_v7 = vmul.f32 0.5, %v708_v11  ;;  %v963_v37 = vmul.f32 0.5, %v714_v12 }
  0xc2   :  { %v338_v39 = vmul.f32 %v779_v24, %v674_v2 }
  0xc3   :  { %1470 = vst [vmem:[#allocation19_spill] sm:$0xff] %v954_v36  ;;  %1471 = vst [vmem:[#allocation20_spill] sm:$0xff] %v963_v37  ;;  %v974_v36 = vmul.f32 0.5, %v722_v14  ;;  %v980_v37 = vmul.f32 0.5, %v700_v9  ;;  %v343_v14 = vmul.f32 %v199_v6, %v716_v13  ;;  %v335_v9 = vmul.f32 %v791_v29, %v684_v5 }
  0xc4   :  { %v1018_v5 = vsel %vm74_vm1, %v848_v60, %v878_v27  ;;  %v1039_v60 = vmul.f32 0.5, %v810_v44 }
  0xc5   :  { %v71_v42 = vpop.permute.xlu1 %70  ;;  %v884_v43 = vpop.permute.xlu0 %68  ;;  %1474 = vst [vmem:[#allocation23_spill] sm:$0xff] %v974_v36  ;;  %1475 = vst [vmem:[#allocation24_spill] sm:$0xff] %v980_v37  ;;  %v1012_v36 = vmul.f32 0.5, %v199_v6 }
  0xc6   :  { %v890_v49 = vsel %vm74_vm1, %v71_v42, %v59_v21  ;;  %v895_v50 = vsel %vm74_vm1, %v884_v43, %v57_v18 }
  0xc7   :  { %1467 = vst [vmem:[#allocation16_spill] sm:$0xff] %v895_v50  ;;  %v901_v33 = vadd.f32 %v882_v31, %v890_v49  ;;  %v907_v52 = vadd.f32 %v886_v48, %v895_v50  ;;  %v951_v50 = vmul.f32 0.5, %v662_v0  ;;  %v342_v0 = vmul.f32 %v201_v62, %v708_v11 }
  0xc8   :  { %v339_v11 = vmul.f32 %v787_v28, %v682_v4  ;;  %v222_v4 = vmul.f32 0.5, %v201_v62  ;;  %v1034_v62 = vsel %vm74_vm1, %v878_v27, %v71_v42  ;;  %v1057_v42 = vmul.f32 0.5, %v818_v46 }
  0xc9   :  { %1468 = vst [vmem:[#allocation17_spill] sm:$0xff] %v901_v33  ;;  %1469 = vst [vmem:[#allocation18_spill] sm:$0xff] %v907_v52  ;;  %v909_v21 = vpop.permute.xlu1 %85  ;;  %v911_v53 = vpop.permute.xlu0 %83  ;;  %v200_v52 = vsel %vm124_vm0, %v188_v38, %v192_v40  ;;  %v966_v38 = vmul.f32 0.5, %v716_v13  ;;  %v346_v40 = vmul.f32 %v202_v63, %v706_v10  ;;  %v971_v33 = vmul.f32 0.5, %v698_v8 }
  0xca   :  { %v347_v41 = vmul.f32 %v200_v52, %v714_v12  ;;  %v334_v10 = vmul.f32 %v783_v25, %v676_v3  ;;  %v988_v8 = vmul.f32 0.5, %v787_v28  ;;  %v994_v12 = vmul.f32 0.5, %v791_v29 }
  0xcb   :  { %1472 = vst [vmem:[#allocation21_spill] sm:$0xff] %v966_v38  ;;  %1473 = vst [vmem:[#allocation22_spill] sm:$0xff] %v971_v33  ;;  %v983_v38 = vmul.f32 0.5, %v724_v15  ;;  %v999_v15 = vmul.f32 0.5, %v795_v32  ;;  %v1002_v3 = vmul.f32 0.5, %v801_v34  ;;  %v226_v25 = vmul.f32 0.5, %v202_v63 }
  0xcc   :  { %v1006_v28 = vadd.f32 %v342_v0, %v334_v10  ;;  %v1008_v13 = vmul.f32 0.5, %v200_v52  ;;  %v1010_v37 = vadd.f32 %v347_v41, %v339_v11  ;;  %v1020_v29 = vadd.f32 %v343_v14, %v335_v9 }
  0xcd   :  { %v913_v18 = vpop.permute.xlu1 %89  ;;  %v915_v54 = vpop.permute.xlu0 %87  ;;  %1476 = vst [vmem:[#allocation25_spill] sm:$0xff] %v983_v38  ;;  %v1004_v38 = vadd.f32 %v346_v40, %v338_v39  ;;  %v1023_v32 = vmul.f32 0.5, %v814_v45  ;;  %v1029_v34 = vsel %vm74_vm1, %v850_v61, %v880_v30  ;;  %v1042_v45 = vmul.f32 0.5, %v822_v47 }
  0xce   :  { %1478 = vst [vmem:[#allocation27_spill] sm:$0xff] %v1006_v28  ;;  %1479 = vst [vmem:[#allocation28_spill] sm:$0xff] %v1010_v37  ;;  %v1048_v61 = vsel %vm74_vm1, %v880_v30, %v884_v43  ;;  %v1054_v27 = vsel %vm99_vm2, %v909_v21, %v913_v18  ;;  %v243_v44 = vsub.f32 %v1018_v5, %v988_v8 }
  0xcf   :  { %1477 = vst [vmem:[#allocation26_spill] sm:$0xff] %v1004_v38  ;;  %1480 = vst [vmem:[#allocation29_spill] sm:$0xff] %v1020_v29  ;;  %v251_v47 = vadd.f32 %v988_v8, %v1018_v5  ;;  %v1067_v30 = vsel %vm99_vm2, %v911_v53, %v915_v54  ;;  %v1073_v6 = vadd.f32 %v994_v12, %v1029_v34 }
  0xd0   :  { %v1079_v40 = vadd.f32 %v999_v15, %v1034_v62  ;;  %v1085_v39 = vadd.f32 %v1002_v3, %v1048_v61  ;;  %v1097_v14 = vadd.f32 %v918_v55, %v1054_v27  ;;  %v1108_v29 = vadd.f32 %v922_v51, %v1067_v30 }
  0xd1   :  { %v946_v48 = vpop.permute.xlu1 %93  ;;  %v948_v1 = vpop.permute.xlu0 %91 }
  0xd2   :  { %v1093_v10 = vsel %vm99_vm2, %v913_v18, %v946_v48  ;;  %v1116_v9 = vsel %vm99_vm2, %v915_v54, %v948_v1 }
  0xd5   :  { %v98_v2 = vpop.permute.xlu1 %97  ;;  %v96_v24 = vpop.permute.xlu0 %95 }
  0xd6   :  { %v1121_v28 = vsel %vm99_vm2, %v946_v48, %v98_v2  ;;  %v1142_v48 = vsel %vm99_vm2, %v98_v2, %v909_v21  ;;  %v1174_v2 = vadd.f32 %v928_v23, %v1116_v9 }
  0xd9   :  { %v136_v63 = vpop.permute.xlu1 %135  ;;  %v1036_v52 = vpop.permute.xlu0 %133 }
  0xdd   :  { %v140_v8 = vpop.permute.xlu1 %139  ;;  %v138_v11 = vpop.permute.xlu0 %137 }
  0xde   :  { %v154_v5 = vsel %vm74_vm1, %v136_v63, %v140_v8  ;;  %v153_v41 = vsel %vm74_vm1, %v1036_v52, %v138_v11 }
  0xdf   :  { %v274_v43 = vsub.f32 %v154_v5, %v226_v25  ;;  %v282_v0 = vadd.f32 %v226_v25, %v154_v5  ;;  %v270_v18 = vsub.f32 %v153_v41, %v222_v4  ;;  %v278_v46 = vadd.f32 %v222_v4, %v153_v41 }
  0xe0   :  { %v1481_v25 = vsub.f32 %v859_v16, %v839_v56  ;;  %v1482_v5 = vsub.f32 %v864_v17, %v842_v57  ;;  %v1147_v56 = vsel %vm99_vm2, %v948_v1, %v96_v24  ;;  %v1152_v57 = vsel %vm99_vm2, %v96_v24, %v911_v53 }
  0xe1   :  { %v1129_v41 = vmin.f32 %v870_v22, %v282_v0  ;;  %v1137_v54 = vmin.f32 %v876_v26, %v278_v46  ;;  %v144_v38 = vpop.permute.xlu1 %143  ;;  %v142_v33 = vpop.permute.xlu0 %141  ;;  %v1166_v26 = vadd.f32 %v925_v35, %v1093_v10 }
  0xe2   :  { %v1126_v4 = vmax.f32 %v1481_v25, %v274_v43  ;;  %v1134_v37 = vmax.f32 %v1482_v5, %v270_v18  ;;  %v152_v16 = vsel %vm74_vm1, %v140_v8, %v144_v38  ;;  %v151_v46 = vsel %vm74_vm1, %v138_v11, %v142_v33 }
  0xe3   :  { %v275_v53 = vsub.f32 %v152_v16, %v1008_v13  ;;  %v283_v1 = vadd.f32 %v1008_v13, %v152_v16  ;;  %v1184_v18 = vadd.f32 %v931_v20, %v1142_v48  ;;  %v1188_v13 = vadd.f32 %v939_v59, %v1121_v28 }
  0xe4   :  { %vm354_vm3 = vcmp.lt.f32.partialorder %v1126_v4, %v1129_v41  ;;  %vm350_vm4 = vcmp.lt.f32.partialorder %v1134_v37, %v1137_v54  ;;  %v271_v25 = vsub.f32 %v151_v46, %v1012_v36  ;;  %v279_v5 = vadd.f32 %v1012_v36, %v151_v46  ;;  %v1486_v46 = vld [vmem:[#allocation17_spill] sm:$0xff] }
  0xe5   :  { %v148_v0 = vpop.permute.xlu1 %147  ;;  %v146_v8 = vpop.permute.xlu0 %145  ;;  %1483 = vst [vmem:[#allocation30_spill] sm:$0xff] %v1188_v13  ;;  %v1203_v21 = vmax.f32 %v243_v44, %v275_v53  ;;  %v1205_v22 = vmin.f32 %v251_v47, %v283_v1  ;;  %v1484_v53 = vsub.f32 %v890_v49, %v882_v31  ;;  %v1490_v31 = vsub.f32 %v1048_v61, %v1002_v3 }
  0xe6   :  { %v150_v16 = vsel %vm74_vm1, %v144_v38, %v148_v0  ;;  %v156_v11 = vsel %vm74_vm1, %v148_v0, %v136_v63  ;;  %v149_v43 = vsel %vm74_vm1, %v142_v33, %v146_v8  ;;  %v155_v24 = vsel %vm74_vm1, %v146_v8, %v1036_v52 }
  0xe7   :  { %v273_v38 = vsub.f32 %v156_v11, %v1023_v32  ;;  %v276_v17 = vsub.f32 %v150_v16, %v1039_v60  ;;  %v281_v63 = vadd.f32 %v1023_v32, %v156_v11  ;;  %v284_v33 = vadd.f32 %v1039_v60, %v150_v16  ;;  %v1487_v11 = vld [vmem:[#allocation16_spill] sm:$0xff] }
  0xe8   :  { %v269_v52 = vsub.f32 %v155_v24, %v1042_v45  ;;  %v272_v44 = vsub.f32 %v149_v43, %v1057_v42  ;;  %v277_v47 = vadd.f32 %v1042_v45, %v155_v24  ;;  %v280_v36 = vadd.f32 %v1057_v42, %v149_v43  ;;  %v1488_v45 = vld [vmem:[#allocation15_spill] sm:$0xff]  ;;  %v1491_v43 = vld [vmem:[#allocation18_spill] sm:$0xff] }
  0xe9   :  { %v1213_v0 = vpop.permute.xlu1 %159  ;;  %v1215_v13 = vpop.permute.xlu0 %157  ;;  %v1224_v1 = vmax.f32 %v1484_v53, %v273_v38  ;;  %v1485_v32 = vsub.f32 %v1034_v62, %v999_v15  ;;  %v1232_v8 = vmin.f32 %v1486_v46, %v281_v63  ;;  %v1235_v16 = vmin.f32 %v1079_v40, %v284_v33 }
  0xea   :  { %v1489_v24 = vsub.f32 %v1487_v11, %v1488_v45  ;;  %v1245_v49 = vmax.f32 %v1490_v31, %v272_v44  ;;  %v1248_v15 = vmin.f32 %v1491_v43, %v277_v47  ;;  %v1251_v62 = vmin.f32 %v1085_v39, %v280_v36  ;;  %v1493_v36 = vld [vmem:[#allocation19_spill] sm:$0xff] }
  0xeb   :  { %v1229_v60 = vmax.f32 %v1485_v32, %v276_v17  ;;  %vm353_vm5 = vcmp.lt.f32.partialorder %v1224_v1, %v1232_v8  ;;  %v393_v40 = vsub.f32 %v1232_v8, %v1224_v1  ;;  %v1492_v63 = vsub.f32 %v1029_v34, %v994_v12 }
  0xec   :  { %v1240_v42 = vmax.f32 %v1489_v24, %v269_v52  ;;  %vm352_vm8 = vcmp.lt.f32.partialorder %v1245_v49, %v1251_v62  ;;  %v392_v38 = vsub.f32 %v1251_v62, %v1245_v49  ;;  %v1275_v52 = vmin.f32 %v1073_v6, %v279_v5 }
  0xed   :  { %vm356_vm6 = vcmp.lt.f32.partialorder %v1229_v60, %v1235_v16  ;;  %v396_v3 = vsub.f32 %v1235_v16, %v1229_v60  ;;  %v164_v61 = vpop.permute.xlu1 %163  ;;  %v162_v17 = vpop.permute.xlu0 %161  ;;  %v1272_v33 = vmax.f32 %v1492_v63, %v271_v25  ;;  %v1289_v34 = vadd.f32 %v951_v50, %v1152_v57  ;;  %v1515_v60 = vld [vmem:[#allocation11_spill] sm:$0xff] }
  0xee   :  { %vm349_vm7 = vcmp.lt.f32.partialorder %v1240_v42, %v1248_v15  ;;  %v389_v39 = vsub.f32 %v1248_v15, %v1240_v42  ;;  %v178_v44 = vsel %vm99_vm2, %v1213_v0, %v164_v61  ;;  %v177_v47 = vsel %vm99_vm2, %v1215_v13, %v162_v17 }
  0xef   :  { %v290_v53 = vsub.f32 %v178_v44, %v1493_v36  ;;  %v298_v32 = vadd.f32 %v1493_v36, %v178_v44  ;;  %v286_v46 = vsub.f32 %v177_v47, %v960_v7  ;;  %v294_v12 = vadd.f32 %v960_v7, %v177_v47  ;;  %v1497_v36 = vld [vmem:[#allocation21_spill] sm:$0xff] }
  0xf0   :  { %v1293_v6 = vadd.f32 %v942_v58, %v1147_v56  ;;  %vm355_vm9 = vcmp.lt.f32.partialorder %v1203_v21, %v1205_v22  ;;  %v395_v25 = vsub.f32 %v1205_v22, %v1203_v21  ;;  %v1494_v45 = vsub.f32 %v1054_v27, %v918_v55 }
  0xf1   :  { %v168_v5 = vpop.permute.xlu1 %167  ;;  %v166_v11 = vpop.permute.xlu0 %165  ;;  %v330_v24 = vmin.f32 %v1097_v14, %v298_v32  ;;  %v1495_v31 = vsub.f32 %v1067_v30, %v922_v51  ;;  %v326_v63 = vmin.f32 %v1108_v29, %v294_v12  ;;  %vm351_vm10 = vcmp.lt.f32.partialorder %v1272_v33, %v1275_v52  ;;  %v1496_v51 = vld [vmem:[#allocation20_spill] sm:$0xff] }
  0xf2   :  { %v314_v7 = vmax.f32 %v1494_v45, %v290_v53  ;;  %v391_v44 = vsub.f32 %v1275_v52, %v1272_v33  ;;  %v176_v47 = vsel %vm99_vm2, %v164_v61, %v168_v5  ;;  %v175_v55 = vsel %vm99_vm2, %v162_v17, %v166_v11 }
  0xf3   :  { %v310_v43 = vmax.f32 %v1495_v31, %v286_v46  ;;  %v291_v29 = vsub.f32 %v176_v47, %v1496_v51  ;;  %v299_v30 = vadd.f32 %v1496_v51, %v176_v47  ;;  %v287_v53 = vsub.f32 %v175_v55, %v1497_v36 }
  0xf4   :  { %vm362_vm11 = vcmp.lt.f32.partialorder %v314_v7, %v330_v24  ;;  %v402_v27 = vsub.f32 %v330_v24, %v314_v7  ;;  %v295_v32 = vadd.f32 %v1497_v36, %v175_v55  ;;  %v615_v46 = vmov 0.0  }
  0xf5   :  { %vm358_vm12 = vcmp.lt.f32.partialorder %v310_v43, %v326_v63  ;;  %v398_v14 = vsub.f32 %v326_v63, %v310_v43  ;;  %vm370_vm13 = vmand %vm354_vm3, %vm362_vm11  ;;  %v172_v61 = vpop.permute.xlu1 %171  ;;  %v1498_v12 = vsub.f32 %v1129_v41, %v1126_v4  ;;  %v1499_v7 = vsub.f32 %v1137_v54, %v1134_v37 }
  0xf6   :  { %v508_v17 = vsel %vm370_vm13, 1.0, %v615_v46  ;;  %vm366_vm14 = vmand %vm350_vm4, %vm358_vm12  ;;  %v174_v31 = vsel %vm99_vm2, %v168_v5, %v172_v61  ;;  %v1500_v63 = vsub.f32 %v1093_v10, %v925_v35  ;;  %v331_v4 = vmin.f32 %v1166_v26, %v299_v30  ;;  %v1502_v35 = vld [vmem:[#allocation22_spill] sm:$0xff] }
  0xf7   :  { %v410_v45 = vmul.f32 %v402_v27, %v1498_v12  ;;  %v406_v24 = vmul.f32 %v398_v14, %v1499_v7  ;;  %v504_v43 = vsel %vm366_vm14, 1.0, %v615_v46  ;;  %v1501_v41 = vsub.f32 %v1116_v9, %v928_v23  ;;  %v1503_v14 = vld [vmem:[#allocation23_spill] sm:$0xff] }
  0xf8   :  { %v315_v47 = vmax.f32 %v1500_v63, %v291_v29  ;;  %v327_v37 = vmin.f32 %v1174_v2, %v295_v32  ;;  %v180_v54 = vsel %vm99_vm2, %v172_v61, %v1213_v0  ;;  %v292_v26 = vsub.f32 %v174_v31, %v1503_v14  ;;  %v1504_v29 = vld [vmem:[#allocation26_spill] sm:$0xff]  ;;  %v1505_v9 = vld [vmem:[#allocation27_spill] sm:$0xff]  ;;  %v170_v61 = vpop.permute.xlu0 %169 }
  0xf9   :  { %v311_v55 = vmax.f32 %v1501_v41, %v287_v53  ;;  %v1342_v27 = vmul.f32 %v508_v17, %v410_v45  ;;  %v1344_v51 = vmul.f32 %v504_v43, %v406_v24  ;;  %v289_v10 = vsub.f32 %v180_v54, %v1502_v35  ;;  %v1508_v43 = vld [vmem:[#allocation30_spill] sm:$0xff] }
  0xfa   :  { %vm363_vm15 = vcmp.lt.f32.partialorder %v315_v47, %v331_v4  ;;  %v403_v5 = vsub.f32 %v331_v4, %v315_v47  ;;  %v297_v53 = vadd.f32 %v1502_v35, %v180_v54  ;;  %v300_v32 = vadd.f32 %v1503_v14, %v174_v31  ;;  %v1509_v47 = vld [vmem:[#allocation28_spill] sm:$0xff] }
  0xfb   :  { %v434_v23 = vsub.f32 %v1504_v29, %v1342_v27  ;;  %v430_v30 = vsub.f32 %v1505_v9, %v1344_v51  ;;  %vm371_vm0 = vmand %vm355_vm9, %vm363_vm15  ;;  %vm359_vm1 = vcmp.lt.f32.partialorder %v311_v55, %v327_v37  ;;  %v399_v2 = vsub.f32 %v327_v37, %v311_v55  ;;  %v1511_v37 = vld [vmem:[#allocation24_spill] sm:$0xff] }
  0xfc   :  { %v509_v0 = vsel %vm371_vm0, 1.0, %v615_v46  ;;  %v411_v36 = vmul.f32 %v403_v5, %v395_v25  ;;  %vm367_vm3 = vmand %vm351_vm10, %vm359_vm1  ;;  %v1506_v7 = vsub.f32 %v1142_v48, %v931_v20  ;;  %v1507_v33 = vsub.f32 %v1121_v28, %v939_v59  ;;  %v1510_v48 = vld [vmem:[#allocation29_spill] sm:$0xff] }
  0xfd   :  { %v442_v17 = vadd.f32 1e-16, %v434_v23  ;;  %v438_v12 = vadd.f32 1e-16, %v430_v30  ;;  %v505_v45 = vsel %vm367_vm3, 1.0, %v615_v46  ;;  %v407_v22 = vmul.f32 %v399_v2, %v391_v44  ;;  %v1516_v2 = vld [vmem:[#allocation12_spill] sm:$0xff] }
  0xfe   :  { %v1366_v21 = vmul.f32 %v509_v0, %v411_v36  ;;  %v313_v25 = vmax.f32 %v1506_v7, %v289_v10  ;;  %v316_v52 = vmax.f32 %v1507_v33, %v292_v26  ;;  %v329_v24 = vmin.f32 %v1184_v18, %v297_v53 }
  0xff   :  { %520 = vrcp.f32 %v442_v17  ;;  %v1375_v31 = vmul.f32 %v505_v45, %v407_v22  ;;  %v332_v63 = vmin.f32 %v1508_v43, %v300_v32  ;;  %v173_v44 = vsel %vm99_vm2, %v166_v11, %v170_v61 }
 0x100   :  { %522 = vrcp.f32 %v438_v12  ;;  %v435_v4 = vsub.f32 %v1509_v47, %v1366_v21  ;;  %vm361_vm4 = vcmp.lt.f32.partialorder %v313_v25, %v329_v24  ;;  %v401_v20 = vsub.f32 %v329_v24, %v313_v25 }
 0x101   :  { %v431_v59 = vsub.f32 %v1510_v48, %v1375_v31  ;;  %vm364_vm9 = vcmp.lt.f32.partialorder %v316_v52, %v332_v63  ;;  %vm369_vm10 = vmand %vm353_vm5, %vm361_vm4  ;;  %v404_v28 = vsub.f32 %v332_v63, %v316_v52  ;;  %v179_v18 = vsel %vm99_vm2, %v170_v61, %v1215_v13  ;;  %v1512_v13 = vld [vmem:[#allocation25_spill] sm:$0xff] }
 0x102   :  { %v443_v11 = vadd.f32 1e-16, %v435_v4  ;;  %vm372_vm11 = vmand %vm356_vm6, %vm364_vm9  ;;  %v507_v41 = vsel %vm369_vm10, 1.0, %v615_v46  ;;  %v409_v55 = vmul.f32 %v401_v20, %v393_v40  ;;  %v285_v54 = vsub.f32 %v179_v18, %v1511_v37  ;;  %v1517_v52 = vld [vmem:[#allocation13_spill] sm:$0xff] }
 0x103   :  { %v439_v5 = vadd.f32 1e-16, %v431_v59  ;;  %v510_v35 = vsel %vm372_vm11, 1.0, %v615_v46  ;;  %v412_v19 = vmul.f32 %v404_v28, %v396_v3  ;;  %v288_v10 = vsub.f32 %v173_v44, %v1512_v13 }
 0x104   :  { %524 = vrcp.f32 %v443_v11  ;;  %v417_v14 = vmul.f32 %v507_v41, %v409_v55  ;;  %v293_v26 = vadd.f32 %v1511_v37, %v179_v18  ;;  %v296_v29 = vadd.f32 %v1512_v13, %v173_v44 }
 0x105   :  { %526 = vrcp.f32 %v439_v5  ;;  %v420_v1 = vmul.f32 %v510_v35, %v412_v19  ;;  %v1513_v8 = vsub.f32 %v1152_v57, %v951_v50  ;;  %v1514_v23 = vsub.f32 %v1147_v56, %v942_v58 }
 0x106   :  { %v433_v16 = vsub.f32 %v1515_v60, %v417_v14  ;;  %v325_v3 = vmin.f32 %v1289_v34, %v293_v26  ;;  %v328_v30 = vmin.f32 %v1293_v6, %v296_v29 }
 0x107   :  { %v309_v40 = vmax.f32 %v1513_v8, %v285_v54  ;;  %v312_v9 = vmax.f32 %v1514_v23, %v288_v10  ;;  %v436_v0 = vsub.f32 %v1516_v2, %v420_v1 }
 0x108   :  { %v441_v36 = vadd.f32 1e-16, %v433_v16 }
 0x109   :  { %vm357_vm2 = vcmp.lt.f32.partialorder %v309_v40, %v325_v3  ;;  %vm360_vm5 = vcmp.lt.f32.partialorder %v312_v9, %v328_v30  ;;  %v397_v53 = vsub.f32 %v325_v3, %v309_v40  ;;  %v521_v32 = vpop.eup %520  ;;  %v444_v61 = vadd.f32 1e-16, %v436_v0 }
 0x10a   :  { %vm365_vm6 = vmand %vm349_vm7, %vm357_vm2  ;;  %v400_v58 = vsub.f32 %v328_v30, %v312_v9  ;;  %v523_v50 = vpop.eup %522  ;;  %v456_v56 = vmul.f32 %v521_v32, %v1342_v27  ;;  %528 = vrcp.f32 %v441_v36 }
 0x10b   :  { %vm368_vm12 = vmand %vm352_vm8, %vm360_vm5  ;;  %v503_v57 = vsel %vm365_vm6, 1.0, %v615_v46  ;;  %v405_v34 = vmul.f32 %v397_v53, %v389_v39  ;;  %v448_v6 = vmul.f32 %v523_v50, %v1344_v51  ;;  %530 = vrcp.f32 %v444_v61  ;;  %v1518_v39 = vld [vmem:[#allocation14_spill] sm:$0xff] }
 0x10c   :  { %v506_v17 = vsel %vm368_vm12, 1.0, %v615_v46  ;;  %v408_v27 = vmul.f32 %v400_v58, %v392_v38  ;;  %v466_v12 = vmul.f32 %v456_v56, %v456_v56 }
 0x10d   :  { %v413_v45 = vmul.f32 %v503_v57, %v405_v34  ;;  %v462_v22 = vmul.f32 %v448_v6, %v448_v6 }
 0x10e   :  { %v416_v7 = vmul.f32 %v506_v17, %v408_v27  ;;  %v525_v25 = vpop.eup %524  ;;  %v474_v33 = vsub.f32 1.0, %v466_v12 }
 0x10f   :  { %v429_v24 = vsub.f32 %v1517_v52, %v413_v45  ;;  %v527_v43 = vpop.eup %526  ;;  %v470_v42 = vsub.f32 1.0, %v462_v22  ;;  %v458_v15 = vmul.f32 %v525_v25, %v1366_v21 }
 0x110   :  { %v432_v51 = vsub.f32 %v1518_v39, %v416_v7  ;;  %482 = vst [vmem:[#allocation7 + $0x28] sm:$0xff] %v474_v33  ;;  %v450_v46 = vmul.f32 %v527_v43, %v1375_v31 }
 0x111   :  { %v437_v63 = vadd.f32 1e-16, %v429_v24  ;;  %478 = vst [vmem:[#allocation7 + $0x8] sm:$0xff] %v470_v42  ;;  %v467_v49 = vmul.f32 %v458_v15, %v458_v15 }
 0x112   :  { %v440_v62 = vadd.f32 1e-16, %v432_v51  ;;  %v463_v38 = vmul.f32 %v450_v46, %v450_v46 }
 0x113   :  { %532 = vrcp.f32 %v437_v63  ;;  %v475_v44 = vsub.f32 1.0, %v467_v49 }
 0x114   :  { %534 = vrcp.f32 %v440_v62  ;;  %v529_v47 = vpop.eup %528  ;;  %v471_v4 = vsub.f32 1.0, %v463_v38 }
 0x115   :  { %v531_v20 = vpop.eup %530  ;;  %483 = vst [vmem:[#allocation7 + $0x30] sm:$0xff] %v475_v44  ;;  %v454_v48 = vmul.f32 %v529_v47, %v417_v14 }
 0x116   :  { %479 = vst [vmem:[#allocation7 + $0x10] sm:$0xff] %v471_v4  ;;  %v460_v21 = vmul.f32 %v531_v20, %v420_v1 }
 0x117   :  { %v465_v59 = vmul.f32 %v454_v48, %v454_v48 }
 0x118   :  { %v468_v28 = vmul.f32 %v460_v21, %v460_v21 }
 0x119   :  { %v473_v18 = vsub.f32 1.0, %v465_v59 }
 0x11a   :  { %v476_v11 = vsub.f32 1.0, %v468_v28 }
 0x11b   :  { %481 = vst [vmem:[#allocation7 + $0x20] sm:$0xff] %v473_v18 }
 0x11c   :  { %484 = vst [vmem:[#allocation7 + $0x38] sm:$0xff] %v476_v11 }
 0x11d   :  { %v533_v31 = vpop.eup %532 }
 0x11e   :  { %v535_v41 = vpop.eup %534  ;;  %v446_v55 = vmul.f32 %v533_v31, %v413_v45 }
 0x11f   :  { %v452_v37 = vmul.f32 %v535_v41, %v416_v7 }
 0x120   :  { %v461_v54 = vmul.f32 %v446_v55, %v446_v55 }
 0x121   :  { %v464_v5 = vmul.f32 %v452_v37, %v452_v37 }
 0x122   :  { %v469_v35 = vsub.f32 1.0, %v461_v54 }
 0x123   :  { %v472_v19 = vsub.f32 1.0, %v464_v5 }
 0x124   :  { %477 = vst [vmem:[#allocation7] sm:$0xff] %v469_v35 }
 0x125   :  { %480 = vst [vmem:[#allocation7 + $0x18] sm:$0xff] %v472_v19 }
 0x126   :  { %591 = shalt.err (!%p588_p6)
}
 0x127   :  { %s592_s13 = scalar_lea.hbm %s1452_s2, 1024 }
 0x128   :  { %p593_p7 = scmp.ne.s32.totalorder %s1452_s2, %s592_s13  ;;  %p596_p8 = scmp.lt.u32.totalorder %s592_s13, %s1452_s2 }
 0x12a   :  { %p598_p9 = pnand %p596_p8, %p593_p7 }
 0x12c   :  { %601 = shalt.err (!%p598_p9)
}
 0x12d   :  { %496 = dma.vmem_to_hbm [thread:$0]  %s491_s9, 1024, %s1452_s2, [#allocation4], %s609_s19, %s609_s19, %s610_s20  }
 0x12e   :  { %606 = dma.done.wait [#allocation4], 1024  }
 0x12f   :  { %607 = vsyncadd [#allocation4], 4294966272 }
 0x130   :  { %500 = vsyncpa [#allocation3], 1 }
 0x131   :  { %501 = vsyncpa [#allocation6], 1 }
 0x132   :  { %502 = vsyncpa [#allocation4], 1 }

</bundles_post_ra>
